<compile_context>
chip_gen: v7x
topology: tpu7x:2x2x1
jax: 0.10.0
libtpu: 0.0.40
codegen_flags: <defaults>
</compile_context>

<pallas_src>
import math
import jax
import jax.numpy as jnp
from jax.experimental import pallas as pl
from jax.experimental.pallas import tpu as pltpu


def _bulkvae_kernel(x_ref, w1_ref, b1_ref, wh_ref, bh_ref, wg_ref, bg_ref,
                    head_ref, gmm_ref):
    """One fused step: all z_dim encoders + gmm head for one batch tile."""
    x = x_ref[...]

    # h_all = relu(x @ W1_stacked + b1_stacked)         (bt, z_dim*hidden_dim)
    h = jnp.dot(x, w1_ref[...], preferred_element_type=jnp.float32) + b1_ref[...]
    h = jnp.maximum(h, 0.0)

    # Fused mu/logvar heads via block-diagonal weight    (bt, 2*z_dim*z_dim)
    head_ref[...] = (jnp.dot(h, wh_ref[...], preferred_element_type=jnp.float32)
                     + bh_ref[...])

    # gmm_weights = x @ Wg + bg                          (bt, z_dim)
    gmm_ref[...] = (jnp.dot(x, wg_ref[...], preferred_element_type=jnp.float32)
                    + bg_ref[...])


def bulk_vae_forward(x, params, *, batch_tile=1024):
    """Forward pass of bulkVAE.

    Returns (mus_stacked, logvars_stacked, gmm_weights) where
    mus_stacked[i] / logvars_stacked[i] equal the i-th entries of the lists
    returned by the PyTorch module.
    """
    w1, b1, wm, bm, wlv, blv, wg, bg = params
    z_dim, input_dim, hidden_dim = w1.shape
    Z, H = z_dim, hidden_dim

    x = x.reshape(-1, input_dim)
    B = x.shape[0]

    # --- wrapper-side layout plumbing (cheap, one-time per call) -------------
    # Stack the z_dim first-layer weights along the output (lane) axis.
    w1s = jnp.transpose(w1, (1, 0, 2)).reshape(input_dim, Z * H)
    b1s = b1.reshape(1, Z * H)

    # Fuse mu/logvar heads into one block-diagonal matrix:
    #   head_w[i*H:(i+1)*H, i*2Z:(i+1)*2Z] = [Wm[i] | Wlv[i]]
    whl = jnp.concatenate([wm, wlv], axis=2)                   # (Z, H, 2Z)
    eye = jnp.eye(Z, dtype=whl.dtype)
    head_w = (eye[:, None, :, None] * whl[:, :, None, :]).reshape(Z * H, 2 * Z * Z)
    head_b = jnp.concatenate([bm, blv], axis=1).reshape(1, 2 * Z * Z)

    bg2 = bg.reshape(1, Z)

    # --- grid / tiling --------------------------------------------------------
    bt = B if B <= batch_tile else batch_tile      # batch tile (v7x 64MiB-safe)
    grid = (pl.cdiv(B, bt),)

    flops = 2 * B * (input_dim * Z * H + Z * H * 2 * Z * Z + input_dim * Z)
    bytes_accessed = 4 * (B * input_dim + input_dim * Z * H + Z * H
                          + Z * H * 2 * Z * Z + 2 * Z * Z + input_dim * Z + Z
                          + B * 2 * Z * Z + B * Z)

    head, gmm = pl.pallas_call(
        _bulkvae_kernel,
        out_shape=(
            jax.ShapeDtypeStruct((B, 2 * Z * Z), jnp.float32),  # [mu|logvar] slab
            jax.ShapeDtypeStruct((B, Z), jnp.float32),          # gmm_weights
        ),
        grid=grid,
        in_specs=[
            pl.BlockSpec((bt, input_dim), lambda i: (i, 0)),     # x (batch-tiled)
            pl.BlockSpec((input_dim, Z * H), lambda i: (0, 0)),  # W1 stacked
            pl.BlockSpec((1, Z * H), lambda i: (0, 0)),          # b1 stacked
            pl.BlockSpec((Z * H, 2 * Z * Z), lambda i: (0, 0)),  # fused head W
            pl.BlockSpec((1, 2 * Z * Z), lambda i: (0, 0)),      # fused head b
            pl.BlockSpec((input_dim, Z), lambda i: (0, 0)),      # Wg
            pl.BlockSpec((1, Z), lambda i: (0, 0)),              # bg
        ],
        out_specs=(
            pl.BlockSpec((bt, 2 * Z * Z), lambda i: (i, 0)),
            pl.BlockSpec((bt, Z), lambda i: (i, 0)),
        ),
        compiler_params=pltpu.CompilerParams(
            dimension_semantics=("parallel",),      # batch tiles are independent
            vmem_limit_bytes=48 * 1024 * 1024,      # fits v7x's 64 MiB VMEM
        ),
        cost_estimate=pl.CostEstimate(
            flops=flops, transcendentals=0, bytes_accessed=bytes_accessed),
    )(x, w1s, b1s, head_w, head_b, wg, bg2)

    # Split the fused slab: component i occupies columns [i*2Z, (i+1)*2Z).
    head = head.reshape(B, Z, 2 * Z)
    mus_stacked = jnp.transpose(head[:, :, :Z], (1, 0, 2))       # (Z, B, Z)
    logvars_stacked = jnp.transpose(head[:, :, Z:], (1, 0, 2))   # (Z, B, Z)
    return mus_stacked, logvars_stacked, gmm


def init_params(key, input_dim, hidden_dim, z_dim):
    """PyTorch-default-style uniform init, stored as (in, out) matrices."""
    ks = jax.random.split(key, 8)

    def lin(k, fan_in, shape):
        bound = 1.0 / math.sqrt(fan_in)
        return jax.random.uniform(k, shape, jnp.float32, -bound, bound)

    w1 = lin(ks[0], input_dim, (z_dim, input_dim, hidden_dim))
    b1 = lin(ks[1], input_dim, (z_dim, hidden_dim))
    wm = lin(ks[2], hidden_dim, (z_dim, hidden_dim, z_dim))
    bm = lin(ks[3], hidden_dim, (z_dim, z_dim))
    wlv = lin(ks[4], hidden_dim, (z_dim, hidden_dim, z_dim))
    blv = lin(ks[5], hidden_dim, (z_dim, z_dim))
    wg = lin(ks[6], input_dim, (input_dim, z_dim))
    bg = lin(ks[7], input_dim, (z_dim,))
    return (w1, b1, wm, bm, wlv, blv, wg, bg)


def reference_forward(x, params):
    """Pure-JAX reference matching the PyTorch module (eval-mode dropout)."""
    w1, b1, wm, bm, wlv, blv, wg, bg = params
    z_dim, input_dim, _ = w1.shape
    x = x.reshape(-1, input_dim)
    mus, logvars = [], []
    for i in range(z_dim):
        h = jax.nn.relu(x @ w1[i] + b1[i])
        mus.append(h @ wm[i] + bm[i])
        logvars.append(h @ wlv[i] + blv[i])
    gmm = x @ wg + bg
    return mus, logvars, gmm


if __name__ == "__main__":
    # Small shapes consistent with the module: args.input_dim=16,
    # args.hidden_dim=32, args.z_dim=4, batch=8.
    input_dim, hidden_dim, z_dim, batch = 16, 32, 4, 8

    key = jax.random.PRNGKey(0)
    kx, kp = jax.random.split(key)
    x = jax.random.normal(kx, (batch, input_dim), jnp.float32)
    params = init_params(kp, input_dim, hidden_dim, z_dim)

    mus, logvars, gmm = jax.block_until_ready(bulk_vae_forward(x, params))

    # Sanity check against pure-JAX reference.
    ref_mus, ref_logvars, ref_gmm = reference_forward(x, params)
    for i in range(z_dim):
        assert jnp.allclose(mus[i], ref_mus[i], atol=1e-5)
        assert jnp.allclose(logvars[i], ref_logvars[i], atol=1e-5)
    assert jnp.allclose(gmm, ref_gmm, atol=1e-5)

    print("KERNEL_OK")
</pallas_src>

<mosaic_0001>
module attributes {stable_mosaic.version = 11 : i64} {
  func.func @_bulkvae_kernel(%arg0: i32, %arg1: memref<8x16xf32, #tpu.memory_space<vmem>>, %arg2: memref<16x128xf32, #tpu.memory_space<vmem>>, %arg3: memref<1x128xf32, #tpu.memory_space<vmem>>, %arg4: memref<128x32xf32, #tpu.memory_space<vmem>>, %arg5: memref<1x32xf32, #tpu.memory_space<vmem>>, %arg6: memref<16x4xf32, #tpu.memory_space<vmem>>, %arg7: memref<1x4xf32, #tpu.memory_space<vmem>>, %arg8: memref<8x32xf32, #tpu.memory_space<vmem>>, %arg9: memref<8x4xf32, #tpu.memory_space<vmem>>) attributes {dimension_semantics = [#tpu.dimension_semantics<parallel>], iteration_bounds = array<i64: 1>, scalar_prefetch = 0 : i64, scratch_operands = 0 : i64, tpu.core_type = #tpu.core_type<tc>, window_params = [{transform_indices = @transform_0, window_bounds = array<i64: 8, 16>}, {pipeline_mode = #tpu.pipeline_mode<synchronous>, transform_indices = @transform_1, window_bounds = array<i64: 16, 128>}, {pipeline_mode = #tpu.pipeline_mode<synchronous>, transform_indices = @transform_2, window_bounds = array<i64: 1, 128>}, {pipeline_mode = #tpu.pipeline_mode<synchronous>, transform_indices = @transform_3, window_bounds = array<i64: 128, 32>}, {pipeline_mode = #tpu.pipeline_mode<synchronous>, transform_indices = @transform_4, window_bounds = array<i64: 1, 32>}, {pipeline_mode = #tpu.pipeline_mode<synchronous>, transform_indices = @transform_5, window_bounds = array<i64: 16, 4>}, {pipeline_mode = #tpu.pipeline_mode<synchronous>, transform_indices = @transform_6, window_bounds = array<i64: 1, 4>}, {transform_indices = @transform_7, window_bounds = array<i64: 8, 32>}, {transform_indices = @transform_8, window_bounds = array<i64: 8, 4>}]} {
    %c0 = arith.constant 0 : index
    %c0_0 = arith.constant 0 : index
    %0 = vector.load %arg1[%c0, %c0_0] : memref<8x16xf32, #tpu.memory_space<vmem>>, vector<8x16xf32>
    %c0_1 = arith.constant 0 : index
    %c0_2 = arith.constant 0 : index
    %1 = vector.load %arg2[%c0_1, %c0_2] : memref<16x128xf32, #tpu.memory_space<vmem>>, vector<16x128xf32>
    %cst = arith.constant dense<0.000000e+00> : vector<8x128xf32>
    %2 = tpu.matmul %0, %1, %cst {dimension_numbers = #tpu.dot_dimension_numbers<[1], [0], [0], [1], [0, 0, 1, 1], [], []>} : vector<8x16xf32>, vector<16x128xf32>, vector<8x128xf32> -> vector<8x128xf32>
    %c0_3 = arith.constant 0 : index
    %c0_4 = arith.constant 0 : index
    %3 = vector.load %arg3[%c0_3, %c0_4] : memref<1x128xf32, #tpu.memory_space<vmem>>, vector<1x128xf32>
    %4 = vector.broadcast %3 : vector<1x128xf32> to vector<8x128xf32>
    %5 = arith.addf %2, %4 : vector<8x128xf32>
    %cst_5 = arith.constant 0.000000e+00 : f32
    %6 = vector.broadcast %cst_5 : f32 to vector<8x128xf32>
    %7 = arith.maximumf %5, %6 : vector<8x128xf32>
    %c0_6 = arith.constant 0 : index
    %c0_7 = arith.constant 0 : index
    %8 = vector.load %arg4[%c0_6, %c0_7] : memref<128x32xf32, #tpu.memory_space<vmem>>, vector<128x32xf32>
    %cst_8 = arith.constant dense<0.000000e+00> : vector<8x32xf32>
    %9 = tpu.matmul %7, %8, %cst_8 {dimension_numbers = #tpu.dot_dimension_numbers<[1], [0], [0], [1], [0, 0, 1, 1], [], []>} : vector<8x128xf32>, vector<128x32xf32>, vector<8x32xf32> -> vector<8x32xf32>
    %c0_9 = arith.constant 0 : index
    %c0_10 = arith.constant 0 : index
    %10 = vector.load %arg5[%c0_9, %c0_10] : memref<1x32xf32, #tpu.memory_space<vmem>>, vector<1x32xf32>
    %11 = vector.broadcast %10 : vector<1x32xf32> to vector<8x32xf32>
    %12 = arith.addf %9, %11 : vector<8x32xf32>
    %c0_11 = arith.constant 0 : index
    %c0_12 = arith.constant 0 : index
    %13 = vector.load %arg8[%c0_11, %c0_12] : memref<8x32xf32, #tpu.memory_space<vmem>>, vector<8x32xf32>
    tpu.vector_store %arg8[%c0_11, %c0_12], %12 {strides = array<i32>} : memref<8x32xf32, #tpu.memory_space<vmem>>, vector<8x32xf32>,
    %c0_13 = arith.constant 0 : index
    %c0_14 = arith.constant 0 : index
    %14 = vector.load %arg6[%c0_13, %c0_14] : memref<16x4xf32, #tpu.memory_space<vmem>>, vector<16x4xf32>
    %cst_15 = arith.constant dense<0.000000e+00> : vector<8x4xf32>
    %15 = tpu.matmul %0, %14, %cst_15 {dimension_numbers = #tpu.dot_dimension_numbers<[1], [0], [0], [1], [0, 0, 1, 1], [], []>} : vector<8x16xf32>, vector<16x4xf32>, vector<8x4xf32> -> vector<8x4xf32>
    %c0_16 = arith.constant 0 : index
    %c0_17 = arith.constant 0 : index
    %16 = vector.load %arg7[%c0_16, %c0_17] : memref<1x4xf32, #tpu.memory_space<vmem>>, vector<1x4xf32>
    %17 = vector.broadcast %16 : vector<1x4xf32> to vector<8x4xf32>
    %18 = arith.addf %15, %17 : vector<8x4xf32>
    %c0_18 = arith.constant 0 : index
    %c0_19 = arith.constant 0 : index
    %19 = vector.load %arg9[%c0_18, %c0_19] : memref<8x4xf32, #tpu.memory_space<vmem>>, vector<8x4xf32>
    tpu.vector_store %arg9[%c0_18, %c0_19], %18 {strides = array<i32>} : memref<8x4xf32, #tpu.memory_space<vmem>>, vector<8x4xf32>,
    return
  }
  func.func @transform_0(%arg0: i32) -> (i32, i32) {
    %c0_i32 = arith.constant 0 : i32
    %c0_i32_0 = arith.constant 0 : i32
    return %arg0, %c0_i32 : i32, i32
  }
  func.func @transform_1(%arg0: i32) -> (i32, i32) {
    %c0_i32 = arith.constant 0 : i32
    %c0_i32_0 = arith.constant 0 : i32
    %c0_i32_1 = arith.constant 0 : i32
    return %c0_i32, %c0_i32_0 : i32, i32
  }
  func.func @transform_2(%arg0: i32) -> (i32, i32) {
    %c0_i32 = arith.constant 0 : i32
    %c0_i32_0 = arith.constant 0 : i32
    %c0_i32_1 = arith.constant 0 : i32
    return %c0_i32, %c0_i32_0 : i32, i32
  }
  func.func @transform_3(%arg0: i32) -> (i32, i32) {
    %c0_i32 = arith.constant 0 : i32
    %c0_i32_0 = arith.constant 0 : i32
    %c0_i32_1 = arith.constant 0 : i32
    return %c0_i32, %c0_i32_0 : i32, i32
  }
  func.func @transform_4(%arg0: i32) -> (i32, i32) {
    %c0_i32 = arith.constant 0 : i32
    %c0_i32_0 = arith.constant 0 : i32
    %c0_i32_1 = arith.constant 0 : i32
    return %c0_i32, %c0_i32_0 : i32, i32
  }
  func.func @transform_5(%arg0: i32) -> (i32, i32) {
    %c0_i32 = arith.constant 0 : i32
    %c0_i32_0 = arith.constant 0 : i32
    %c0_i32_1 = arith.constant 0 : i32
    return %c0_i32, %c0_i32_0 : i32, i32
  }
  func.func @transform_6(%arg0: i32) -> (i32, i32) {
    %c0_i32 = arith.constant 0 : i32
    %c0_i32_0 = arith.constant 0 : i32
    %c0_i32_1 = arith.constant 0 : i32
    return %c0_i32, %c0_i32_0 : i32, i32
  }
  func.func @transform_7(%arg0: i32) -> (i32, i32) {
    %c0_i32 = arith.constant 0 : i32
    %c0_i32_0 = arith.constant 0 : i32
    return %arg0, %c0_i32 : i32, i32
  }
  func.func @transform_8(%arg0: i32) -> (i32, i32) {
    %c0_i32 = arith.constant 0 : i32
    %c0_i32_0 = arith.constant 0 : i32
    return %arg0, %c0_i32 : i32, i32
  }
}

</mosaic_0001>

<bundles_post_ra>
// kernel: tpu_custom_call.1
= control target key start
LH: loop header
LB: loop body
LE: loop exit
PB: predicated region body
PF: predicated region fallthrough
CT: control target
= control target key end

     0   :  { %v443_v2 = vmov 0.0|0.0   ;;  %vm444_vm0 = vmmov 0   ;;  %v445_v4 = vmov 0.0   ;;  %vm39_vm1 = vcmask 130048   ;;  %s584_s0 = inlined_call_operand.vmem [shape: f32[8,16], index: 0, kind: input, shape index: {}]   ;;  %s585_s1 = inlined_call_operand.vmem [shape: f32[16,128], index: 1, kind: input, shape index: {}]   ;;  %s586_s2 = inlined_call_operand.vmem [shape: f32[1,128], index: 2, kind: input, shape index: {}]   ;;  %s587_s3 = inlined_call_operand.vmem [shape: f32[128,32], index: 3, kind: input, shape index: {}]   ;;  %s588_s4 = inlined_call_operand.vmem [shape: f32[1,32], index: 4, kind: input, shape index: {}]   ;;  %s589_s5 = inlined_call_operand.vmem [shape: f32[16,4], index: 5, kind: input, shape index: {}]   ;;  %s590_s6 = inlined_call_operand.vmem [shape: f32[1,4], index: 6, kind: input, shape index: {}]   ;;  %s591_s7 = inlined_call_operand.hbm [shape: f32[8,32], index: 7, kind: output, shape index: {0}]   ;;  %s592_s8 = inlined_call_operand.vmem [shape: f32[8,4], index: 8, kind: output, shape index: {1}]  }
   0x1   :  { %v30_v0 = vld [vmem:[%s585_s1] sm:$0xff]  ;;  %v31_v1 = vld [vmem:[%s585_s1 + $0x8] sm:$0xff]  ;;  %385 = vmatprep.subr.bf16.mxu0 %v443_v2  ;;  %340 = vmatprep.mubr.msk.f32.mxu0 %vm444_vm0, %v445_v4  ;;  %v116_v7 = vld [vmem:[%s587_s3 + $0x10] sm:$0xff] }
   0x2   :  { %v386_v3 = vpack.c.bf16 %v31_v1, %v30_v0  ;;  %v114_v5 = vld [vmem:[%s587_s3] sm:$0xff]  ;;  %v115_v6 = vld [vmem:[%s587_s3 + $0x8] sm:$0xff]  ;;  %388 = vmatprep.subr.bf16.mxu1 %v443_v2  ;;  %v117_v9 = vld [vmem:[%s587_s3 + $0x18] sm:$0xff]  ;;  %375 = vmatprep.mubr.msk.f32.mxu1 %vm444_vm0, %v445_v4 }
   0x3   :  { %v389_v8 = vpack.c.bf16 %v115_v6, %v114_v5  ;;  %v29_v10 = vld [vmem:[%s584_s0] sm:$0xff]  ;;  %v392_v11 = vpack.c.bf16 %v117_v9, %v116_v7  ;;  %v119_v13 = vld [vmem:[%s587_s3 + $0x28] sm:$0xff] }
   0x4   :  { %387 = vmatpush3.bf16.msra.mxu0 %v386_v3  ;;  %v118_v12 = vld [vmem:[%s587_s3 + $0x20] sm:$0xff] }
   0x5   :  { %390 = vmatpush3.bf16.msra.mxu1 %v389_v8  ;;  %412 = vmatprep.subr.bf16.mxu0 %v443_v2 }
   0x6   :  { %391 = vmatprep.subr.bf16.mxu1 %v443_v2 }
   0x7   :  { %341 = vmatmul.mubr.msk.f32.vlgmr.msra.gmra.mrb[0].mxu0 %vm39_vm1, %v29_v10 }
   0x8   :  { %14 = vsyncpa [#allocation3], 0  ;;  %382 = vmatprep.mubr.msk.f32.mxu0 %vm444_vm0, %v445_v4  ;;  %v395_v14 = vpack.c.bf16 %v119_v13, %v118_v12  ;;  %v120_v15 = vld [vmem:[%s587_s3 + $0x30] sm:$0xff]  ;;  %v121_v16 = vld [vmem:[%s587_s3 + $0x38] sm:$0xff]  ;;  %vm288_vm2 = vcmask 31744   ;;  %vm207_vm3 = vcmask 261120  }
   0x9   :  { %393 = vmatpush3.bf16.msra.mxu1 %v392_v11  ;;  %v398_v17 = vpack.c.bf16 %v121_v16, %v120_v15  ;;  %v122_v18 = vld [vmem:[%s587_s3 + $0x40] sm:$0xff]  ;;  %v123_v19 = vld [vmem:[%s587_s3 + $0x48] sm:$0xff]  ;;  %v124_v21 = vld [vmem:[%s587_s3 + $0x50] sm:$0xff] }
   0xa   :  { %394 = vmatprep.subr.bf16.mxu1 %v443_v2  ;;  %v401_v20 = vpack.c.bf16 %v123_v19, %v122_v18  ;;  %v125_v22 = vld [vmem:[%s587_s3 + $0x58] sm:$0xff]  ;;  %v126_v24 = vld [vmem:[%s587_s3 + $0x60] sm:$0xff]  ;;  %v127_v25 = vld [vmem:[%s587_s3 + $0x68] sm:$0xff] }
   0xb   :  { %v404_v23 = vpack.c.bf16 %v125_v22, %v124_v21  ;;  %v407_v26 = vpack.c.bf16 %v127_v25, %v126_v24  ;;  %v128_v27 = vld [vmem:[%s587_s3 + $0x70] sm:$0xff]  ;;  %v129_v28 = vld [vmem:[%s587_s3 + $0x78] sm:$0xff]  ;;  %v209_v29 = vld [vmem:[%s589_s5] sm:$0xff] }
   0xc   :  { %v410_v30 = vpack.c.bf16 %v129_v28, %v128_v27  ;;  %v210_v31 = vld [vmem:[%s589_s5 + $0x8] sm:$0xff]  ;;  %v308_v33 = vld [vmem:[%s586_s2] ss:$0 sm:$0xff]  ;;  %s446_s2 = smov [#allocation2]  }
   0xd   :  { %396 = vmatpush3.bf16.msra.mxu1 %v395_v14  ;;  %v413_v32 = vpack.c.bf16 %v210_v31, %v209_v29  ;;  %v311_v38 = vld [vmem:[%s590_s6] ss:$0 sm:$0xff]  ;;  %s296_s27 = sshll.u32 %s446_s2, 4  ;;  %s297_s27 = int_to_ptr.vmem [resolvable:$true] %s296_s27 }
   0xe   :  { %397 = vmatprep.subr.bf16.mxu1 %v443_v2  ;;  %v310_v42 = vld [vmem:[%s588_s4] ss:$0 sm:$0xff]  ;;  %s419_s6 = scalar_lea.vmem %s297_s27, 128  ;;  %p424_p1 = scmp.lt.s32.totalorder %s297_s27, %s297_s27 }
   0xf   :  { %414 = vmatpush3.bf16.msra.mxu0 %v413_v32  ;;  %p420_p0 = scmp.ne.s32.totalorder %s297_s27, %s419_s6  ;;  %p425_p2 = scmp.lt.s32.totalorder %s419_s6, %s419_s6 }
  0x11   :  { %399 = vmatpush3.bf16.msra.mxu1 %v398_v17  ;;  %p426_p3 = por %p425_p2, %p424_p1 }
  0x12   :  { %400 = vmatprep.subr.bf16.mxu1 %v443_v2  ;;  %383 = vmatmul.mubr.msk.f32.vlgmr.msra.gmra.mrb[2].mxu0 %vm39_vm1, %v29_v10 }
  0x13   :  { %p427_p4 = pnand %p426_p3, %p420_p0 }
  0x15   :  { %402 = vmatpush3.bf16.msra.mxu1 %v401_v20 }
  0x16   :  { %403 = vmatprep.subr.bf16.mxu1 %v443_v2 }
  0x19   :  { %405 = vmatpush3.bf16.msra.mxu1 %v404_v23 }
  0x1a   :  { %406 = vmatprep.subr.bf16.mxu1 %v443_v2 }
  0x1d   :  { %408 = vmatpush3.bf16.msra.mxu1 %v407_v26 }
  0x1e   :  { %409 = vmatprep.subr.bf16.mxu1 %v443_v2 }
  0x21   :  { %411 = vmatpush3.bf16.msra.mxu1 %v410_v30 }
  0xda   :  { %v109_v34 = vpop.f32.mrb[0].mxu0 }
  0xdb   :  { %v110_v35 = vadd.f32 %v308_v33, %v109_v34  ;;  %v342_v36 = vpop.f32.mrb[1].mxu0 }
  0xdd   :  { %v113_v37 = vmax.f32 %v110_v35, 0.0 }
  0xdf   :  { %376 = vmatmul.mubr.f32.vlgmr.msra.gmra.mrb[0].mxu1 %v113_v37 }
  0xe5   :  { %v284_v39 = vpop.f32.mrb[2].mxu0 }
  0xe6   :  { %v285_v40 = vadd.f32 %v311_v38, %v284_v39  ;;  %v384_v41 = vpop.f32.mrb[3].mxu0 }
  0xe8   :  { %289 = vst.msk [vmem:[%s592_s8] sm:$0xff] %vm288_vm2, %v285_v40 }
 0x1b2   :  { %v203_v43 = vpop.f32.mrb[0].mxu1 }
 0x1b3   :  { %v204_v44 = vadd.f32 %v310_v42, %v203_v43  ;;  %v377_v45 = vpop.f32.mrb[1].mxu1 }
 0x1b5   :  { %208 = vst.msk [vmem:[#allocation2] sm:$0xff] %vm207_vm3, %v204_v44 }
 0x1b6   :  { %430 = shalt.err (!%p427_p4)
}
 0x1b7   :  { %s431_s29 = scalar_lea.hbm %s591_s7, 128 }
 0x1b8   :  { %p432_p5 = scmp.ne.s32.totalorder %s591_s7, %s431_s29  ;;  %p435_p6 = scmp.lt.u32.totalorder %s431_s29, %s591_s7 }
 0x1ba   :  { %p437_p7 = pnand %p435_p6, %p432_p5 }
 0x1bc   :  { %440 = shalt.err (!%p437_p7)
}
 0x1bd   :  { %299 = dma.vmem_to_hbm [thread:$0]  %s297_s27, 128, %s591_s7, [#allocation3]  }
 0x1be   :  { %441 = dma.done.wait [#allocation3], 128  }
 0x1bf   :  { %442 = vsyncadd [#allocation3], 4294967168 }
 0x1c0   :  { %307 = vsyncpa [#allocation3], 1 }

</bundles_post_ra>
